<compile_context>
chip_gen: v6e
topology: v6e:2x2x1
jax: 0.10.0
libtpu: 0.0.40
codegen_flags: <defaults>
</compile_context>

<pallas_src>
import math
import functools
import jax
import jax.numpy as jnp
from jax.experimental import pallas as pl
from jax.experimental.pallas import tpu as pltpu


def _round_up(x, m):
    return (x + m - 1) // m * m


def _divisor_tile(total, target, mult):
    """Largest multiple of `mult` that divides `total` and is <= target (>= mult)."""
    target = max(target, mult)
    best = mult
    t = mult
    while t <= min(target, total):
        if total % t == 0:
            best = t
        t += mult
    return best


# ----------------------------- kernels --------------------------------------


def _mlp_kernel_multi_k(x_ref, w_ref, b_ref, o_ref, acc_ref):
    # x_ref: [tm, tk]  w_ref: [tk, tn] ([in, out])  b_ref: [1, tn]
    # o_ref: [tm, tn]  acc_ref: [tm, tn] f32 scratch (resident across k)
    k = pl.program_id(2)

    @pl.when(k == 0)
    def _():
        # Seed the accumulator with the bias so the epilogue is just tanh().
        acc_ref[...] = jnp.broadcast_to(
            b_ref[...].astype(jnp.float32), acc_ref.shape
        )

    acc_ref[...] += jnp.dot(
        x_ref[...], w_ref[...], preferred_element_type=jnp.float32
    )

    @pl.when(k == pl.num_programs(2) - 1)
    def _():
        o_ref[...] = jnp.tanh(acc_ref[...]).astype(o_ref.dtype)


def _mlp_kernel_single_k(x_ref, w_ref, b_ref, o_ref):
    # Single reduction step: no scratch, fused dot + bias + tanh.
    y = jnp.dot(x_ref[...], w_ref[...], preferred_element_type=jnp.float32)
    y = y + b_ref[...].astype(jnp.float32)
    o_ref[...] = jnp.tanh(y).astype(o_ref.dtype)


# ----------------------------- wrapper --------------------------------------


def prepare_mlp_params(weight, bias, compute_dtype=None):
    """One-time parameter prep (call at init, NOT per forward call).

    weight: [out=hidden, in=hidden] (PyTorch nn.Linear layout); bias: [hidden].
    Returns (w_p [hidden_p, hidden_p] in [in, out] layout, b_p [1, hidden_p],
    hidden).  compute_dtype (e.g. jnp.bfloat16) trades accuracy for MXU
    throughput on v6e/v7x.
    """
    out_f, in_f = weight.shape
    assert out_f == in_f, "MLPLayer is a square hidden->hidden projection"
    hidden = in_f
    hidden_p = _round_up(hidden, 128)

    wt = weight.T  # [in, out] -> kernel does x @ W with no in-kernel transpose
    if compute_dtype is not None:
        wt = wt.astype(compute_dtype)
    if hidden_p != hidden:
        w_p = jnp.zeros((hidden_p, hidden_p), wt.dtype).at[:hidden, :hidden].set(wt)
        b_p = jnp.zeros((1, hidden_p), bias.dtype).at[0, :hidden].set(bias)
    else:
        w_p = wt
        b_p = bias.reshape(1, hidden_p)
    return w_p, b_p, hidden


def mlp_layer(features, w_p, b_p, hidden, *,
              tm_target=512, tn_target=1024, tk_target=1024):
    """tanh(features @ W.T + b) with pre-prepared (w_p, b_p) from prepare_mlp_params."""
    orig_shape = features.shape
    assert orig_shape[-1] == hidden
    x2d = features.reshape(-1, hidden)
    rows = x2d.shape[0]
    hidden_p = w_p.shape[0]

    if x2d.dtype != w_p.dtype:
        x2d = x2d.astype(w_p.dtype)  # match MXU operand dtype (e.g. bf16 weights)

    # Pad only when needed: K/lane padding is required for reduction
    # correctness; row padding only up to a multiple of 8 (sublane).  In the
    # common case (rows % 8 == 0, hidden % 128 == 0) this is a no-op view.
    rows_al = _round_up(rows, 8)
    if rows_al != rows or hidden_p != hidden:
        x_p = jnp.pad(x2d, ((0, rows_al - rows), (0, hidden_p - hidden)))
    else:
        x_p = x2d

    # --- tile selection (lane-dense, divisors of the padded hidden) ---------
    tn = _divisor_tile(hidden_p, tn_target, 128)   # output-feature tile
    tk = _divisor_tile(hidden_p, tk_target, 128)   # reduction tile (decoupled from tn)
    tm = min(tm_target, rows_al)                   # row tile (multiple of 8)

    grid_i = pl.cdiv(rows_al, tm)
    grid_j = hidden_p // tn
    grid_k = hidden_p // tk

    # v7x has 2 TensorCores: if everything collapsed to one (i, j) tile but
    # there are plenty of rows, split the row axis so a parallel axis has
    # extent >= 2 (negligible cost on the single-TC v5e/v6e).
    if grid_i == 1 and grid_j == 1 and rows_al >= 256:
        tm = _round_up((rows_al + 1) // 2, 8)
        grid_i = pl.cdiv(rows_al, tm)

    out_dtype = features.dtype
    in_bytes = jnp.dtype(x_p.dtype).itemsize
    out_bytes = jnp.dtype(out_dtype).itemsize
    # Double-buffered inputs + output tile + f32 accumulator.
    working = (2 * (tm * tk + tk * tn + tn) * in_bytes
               + 2 * tm * tn * out_bytes
               + tm * tn * 4)
    # TODO(synk): re-derive tile targets per generation (v7x: 64 MiB VMEM total).
    vmem_limit = int(max(32 * 1024 * 1024,
                         min(working * 13 // 10, 64 * 1024 * 1024)))

    if grid_k == 1:
        out = pl.pallas_call(
            _mlp_kernel_single_k,
            out_shape=jax.ShapeDtypeStruct((rows_al, hidden_p), out_dtype),
            grid_spec=pltpu.PrefetchScalarGridSpec(
                num_scalar_prefetch=0,
                grid=(grid_i, grid_j),
                in_specs=[
                    pl.BlockSpec((tm, tk), lambda i, j: (i, 0)),
                    pl.BlockSpec((tk, tn), lambda i, j: (0, j)),
                    pl.BlockSpec((1, tn), lambda i, j: (0, j)),
                ],
                out_specs=pl.BlockSpec((tm, tn), lambda i, j: (i, j)),
            ),
            compiler_params=pltpu.CompilerParams(
                dimension_semantics=("parallel", "parallel"),
                vmem_limit_bytes=vmem_limit,
            ),
        )(x_p, w_p, b_p)
    else:
        out = pl.pallas_call(
            _mlp_kernel_multi_k,
            out_shape=jax.ShapeDtypeStruct((rows_al, hidden_p), out_dtype),
            grid_spec=pltpu.PrefetchScalarGridSpec(
                num_scalar_prefetch=0,
                grid=(grid_i, grid_j, grid_k),
                in_specs=[
                    # x tile depends on (row tile i, K step k)
                    pl.BlockSpec((tm, tk), lambda i, j, k: (i, k)),
                    # W tile independent of the row axis -> reused across row tiles
                    pl.BlockSpec((tk, tn), lambda i, j, k: (k, j)),
                    # bias: one (1, tn) block per N tile
                    pl.BlockSpec((1, tn), lambda i, j, k: (0, j)),
                ],
                out_specs=pl.BlockSpec((tm, tn), lambda i, j, k: (i, j)),
                scratch_shapes=[pltpu.VMEM((tm, tn), jnp.float32)],
            ),
            compiler_params=pltpu.CompilerParams(
                dimension_semantics=("parallel", "parallel", "arbitrary"),
                vmem_limit_bytes=vmem_limit,
            ),
        )(x_p, w_p, b_p)

    if rows_al != rows or hidden_p != hidden:
        out = out[:rows, :hidden]
    return out.reshape(orig_shape)


def init_linear_params(key, hidden):
    """Deterministic init mirroring nn.Linear defaults: U(-1/sqrt(in), 1/sqrt(in))."""
    kw, kb = jax.random.split(key)
    bound = 1.0 / math.sqrt(hidden)
    weight = jax.random.uniform(kw, (hidden, hidden), jnp.float32, -bound, bound)
    bias = jax.random.uniform(kb, (hidden,), jnp.float32, -bound, bound)
    return weight, bias


if __name__ == "__main__":
    key = jax.random.PRNGKey(0)
    k_x, k_p = jax.random.split(key)

    batch, seq, hidden = 2, 8, 32
    features = jax.random.normal(k_x, (batch, seq, hidden), jnp.float32)
    weight, bias = init_linear_params(k_p, hidden)

    # One-time parameter prep (transpose + lane padding), hoisted out of the
    # forward pass per the perf review.
    w_p, b_p, hidden = prepare_mlp_params(weight, bias)

    fwd = jax.jit(functools.partial(mlp_layer, w_p=w_p, b_p=b_p, hidden=hidden))
    out = jax.block_until_ready(fwd(features))

    # correctness check against plain JAX reference (f32 end-to-end here)
    ref = jnp.tanh(features @ weight.T + bias)
    assert out.shape == features.shape
    assert jnp.allclose(out, ref, atol=1e-5, rtol=1e-5)

    print("KERNEL_OK")
</pallas_src>

<mosaic_0001>
module attributes {stable_mosaic.version = 11 : i64} {
  func.func @_mlp_kernel_single_k(%arg0: i32, %arg1: i32, %arg2: memref<16x128xf32, #tpu.memory_space<vmem>>, %arg3: memref<128x128xf32, #tpu.memory_space<vmem>>, %arg4: memref<1x128xf32, #tpu.memory_space<vmem>>, %arg5: memref<16x128xf32, #tpu.memory_space<vmem>>) attributes {dimension_semantics = [#tpu.dimension_semantics<parallel>, #tpu.dimension_semantics<parallel>], iteration_bounds = array<i64: 1, 1>, scalar_prefetch = 0 : i64, scratch_operands = 0 : i64, tpu.core_type = #tpu.core_type<tc>, window_params = [{transform_indices = @transform_0, window_bounds = array<i64: 16, 128>}, {transform_indices = @transform_1, window_bounds = array<i64: 128, 128>}, {transform_indices = @transform_2, window_bounds = array<i64: 1, 128>}, {transform_indices = @transform_3, window_bounds = array<i64: 16, 128>}]} {
    %c0 = arith.constant 0 : index
    %c0_0 = arith.constant 0 : index
    %0 = vector.load %arg2[%c0, %c0_0] : memref<16x128xf32, #tpu.memory_space<vmem>>, vector<16x128xf32>
    %c0_1 = arith.constant 0 : index
    %c0_2 = arith.constant 0 : index
    %1 = vector.load %arg3[%c0_1, %c0_2] : memref<128x128xf32, #tpu.memory_space<vmem>>, vector<128x128xf32>
    %cst = arith.constant dense<0.000000e+00> : vector<16x128xf32>
    %2 = tpu.matmul %0, %1, %cst {dimension_numbers = #tpu.dot_dimension_numbers<[1], [0], [0], [1], [0, 0, 1, 1], [], []>} : vector<16x128xf32>, vector<128x128xf32>, vector<16x128xf32> -> vector<16x128xf32>
    %c0_3 = arith.constant 0 : index
    %c0_4 = arith.constant 0 : index
    %3 = vector.load %arg4[%c0_3, %c0_4] : memref<1x128xf32, #tpu.memory_space<vmem>>, vector<1x128xf32>
    %4 = vector.broadcast %3 : vector<1x128xf32> to vector<16x128xf32>
    %5 = arith.addf %2, %4 : vector<16x128xf32>
    %6 = math.tanh %5 : vector<16x128xf32>
    %c0_5 = arith.constant 0 : index
    %c0_6 = arith.constant 0 : index
    %7 = vector.load %arg5[%c0_5, %c0_6] : memref<16x128xf32, #tpu.memory_space<vmem>>, vector<16x128xf32>
    tpu.vector_store %arg5[%c0_5, %c0_6], %6 {strides = array<i32>} : memref<16x128xf32, #tpu.memory_space<vmem>>, vector<16x128xf32>,
    return
  }
  func.func @transform_0(%arg0: i32, %arg1: i32) -> (i32, i32) {
    %c0_i32 = arith.constant 0 : i32
    %c0_i32_0 = arith.constant 0 : i32
    return %arg0, %c0_i32 : i32, i32
  }
  func.func @transform_1(%arg0: i32, %arg1: i32) -> (i32, i32) {
    %c0_i32 = arith.constant 0 : i32
    %c0_i32_0 = arith.constant 0 : i32
    return %c0_i32, %arg1 : i32, i32
  }
  func.func @transform_2(%arg0: i32, %arg1: i32) -> (i32, i32) {
    %c0_i32 = arith.constant 0 : i32
    %c0_i32_0 = arith.constant 0 : i32
    return %c0_i32, %arg1 : i32, i32
  }
  func.func @transform_3(%arg0: i32, %arg1: i32) -> (i32, i32) {
    %c0_i32 = arith.constant 0 : i32
    return %arg0, %arg1 : i32, i32
  }
}

</mosaic_0001>

<bundles_post_ra>
// kernel: mlp_layer.1
= control target key start
LH: loop header
LB: loop body
LE: loop exit
PB: predicated region body
PF: predicated region fallthrough
CT: control target
= control target key end

     0   :  { %8 = vsyncpa [#allocation3], 0  ;;  %s220_s12 = smov [#allocation2]   ;;  %s261_s0 = inlined_call_operand.vmem [shape: f32[16,128], index: 0, kind: input, shape index: {}]   ;;  %s262_s1 = inlined_call_operand.hbm [shape: f32[128,128], index: 1, kind: input, shape index: {}]   ;;  %s263_s2 = inlined_call_operand.vmem [shape: f32[1,128], index: 2, kind: input, shape index: {}]   ;;  %s264_s3 = inlined_call_operand.vmem [shape: f32[16,128], index: 3, kind: output, shape index: {}]  }
   0x1   :  { %s16_s13 = sshll.u32 %s220_s12, 4  ;;  %s17_s13 = int_to_ptr.vmem [resolvable:$true] %s16_s13 }
   0x2   :  { %s206_s14 = scalar_lea.vmem %s17_s13, 2048  ;;  %p211_p1 = scmp.lt.s32.totalorder %s17_s13, %s17_s13 }
   0x3   :  { %p207_p0 = scmp.ne.s32.totalorder %s17_s13, %s206_s14  ;;  %p212_p2 = scmp.lt.s32.totalorder %s206_s14, %s206_s14 }
   0x5   :  { %p213_p3 = por %p212_p2, %p211_p1 }
   0x7   :  { %p214_p4 = pnand %p213_p3, %p207_p0 }
   0x9   :  { %217 = shalt.err (!%p214_p4)
}
   0xa   :  { %s221_s15 = smov 128   ;;  %s222_s16 = smov 8  }
   0xb   :  { %22 = dma.hbm_to_vmem [thread:$0]  %s262_s1, 2048, %s17_s13, [#allocation3], %s221_s15, %s221_s15, %s222_s16  }
   0xc   :  { %218 = dma.done.wait [#allocation3], 2048  }
   0xd   :  { %219 = vsyncadd [#allocation3], 4294965248  ;;  %v45_v0 = vld [vmem:[#allocation2 + $0x78] sm:$0xff]  ;;  %v44_v1 = vld [vmem:[#allocation2 + $0x70] sm:$0xff] }
   0xe   :  { %156 = vmatprep.subr.mxu0 %v45_v0  ;;  %v43_v2 = vld [vmem:[#allocation2 + $0x68] sm:$0xff]  ;;  %v42_v3 = vld [vmem:[#allocation2 + $0x60] sm:$0xff]  ;;  %v41_v5 = vld [vmem:[#allocation2 + $0x58] sm:$0xff] }
   0xf   :  { %157 = vmatpush3.msra.mxu0 %v45_v0  ;;  %v28_v4 = vld [vmem:[%s261_s0] sm:$0xff]  ;;  %v40_v6 = vld [vmem:[#allocation2 + $0x50] sm:$0xff]  ;;  %v39_v7 = vld [vmem:[#allocation2 + $0x48] sm:$0xff] }
  0x10   :  { %158 = vmatprep.subr.mxu0 %v44_v1  ;;  %188 = vmatprep.mubr.f32.mxu0 %v28_v4  ;;  %v38_v8 = vld [vmem:[#allocation2 + $0x40] sm:$0xff]  ;;  %v37_v9 = vld [vmem:[#allocation2 + $0x38] sm:$0xff]  ;;  %v36_v10 = vld [vmem:[#allocation2 + $0x30] sm:$0xff] }
  0x11   :  { %159 = vmatpush3.msra.mxu0 %v44_v1  ;;  %v35_v11 = vld [vmem:[#allocation2 + $0x28] sm:$0xff]  ;;  %v34_v12 = vld [vmem:[#allocation2 + $0x20] sm:$0xff]  ;;  %v33_v13 = vld [vmem:[#allocation2 + $0x18] sm:$0xff] }
  0x12   :  { %160 = vmatprep.subr.mxu0 %v43_v2  ;;  %v32_v14 = vld [vmem:[#allocation2 + $0x10] sm:$0xff]  ;;  %v31_v15 = vld [vmem:[#allocation2 + $0x8] sm:$0xff]  ;;  %v30_v16 = vld [vmem:[#allocation2] sm:$0xff] }
  0x13   :  { %161 = vmatpush3.msra.mxu0 %v43_v2  ;;  %v29_v17 = vld [vmem:[%s261_s0 + $0x8] sm:$0xff]  ;;  %v137_v18 = vld [vmem:[%s263_s2] ss:$0 sm:$0xff] }
  0x14   :  { %162 = vmatprep.subr.mxu0 %v42_v3 }
  0x15   :  { %163 = vmatpush3.msra.mxu0 %v42_v3 }
  0x16   :  { %164 = vmatprep.subr.mxu0 %v41_v5 }
  0x17   :  { %165 = vmatpush3.msra.mxu0 %v41_v5 }
  0x18   :  { %166 = vmatprep.subr.mxu0 %v40_v6 }
  0x19   :  { %167 = vmatpush3.msra.mxu0 %v40_v6 }
  0x1a   :  { %168 = vmatprep.subr.mxu0 %v39_v7 }
  0x1b   :  { %169 = vmatpush3.msra.mxu0 %v39_v7 }
  0x1c   :  { %170 = vmatprep.subr.mxu0 %v38_v8 }
  0x1d   :  { %171 = vmatpush3.msra.mxu0 %v38_v8 }
  0x1e   :  { %172 = vmatprep.subr.mxu0 %v37_v9 }
  0x1f   :  { %173 = vmatpush3.msra.mxu0 %v37_v9 }
  0x20   :  { %174 = vmatprep.subr.mxu0 %v36_v10 }
  0x21   :  { %175 = vmatpush3.msra.mxu0 %v36_v10 }
  0x22   :  { %176 = vmatprep.subr.mxu0 %v35_v11 }
  0x23   :  { %177 = vmatpush3.msra.mxu0 %v35_v11 }
  0x24   :  { %178 = vmatprep.subr.mxu0 %v34_v12 }
  0x25   :  { %179 = vmatpush3.msra.mxu0 %v34_v12 }
  0x26   :  { %180 = vmatprep.subr.mxu0 %v33_v13 }
  0x27   :  { %181 = vmatpush3.msra.mxu0 %v33_v13 }
  0x28   :  { %182 = vmatprep.subr.mxu0 %v32_v14 }
  0x29   :  { %183 = vmatpush3.msra.mxu0 %v32_v14 }
  0x2a   :  { %184 = vmatprep.subr.mxu0 %v31_v15 }
  0x2b   :  { %185 = vmatpush3.msra.mxu0 %v31_v15 }
  0x2c   :  { %186 = vmatprep.subr.mxu0 %v30_v16 }
  0x2d   :  { %187 = vmatpush3.msra.mxu0 %v30_v16 }
  0x2e   :  { %189 = vmatmul.mubr.f32.vlgmr.msra.gmra.mxu0 %v29_v17 }
  0xee   :  { %v190_v19 = vpop.f32.mrf.mxu0 }
  0xef   :  { %v125_v20 = vadd.f32 %v190_v19, %v137_v18 }
  0xf0   :  { %v119_v21 = vpop.f32.mrf.mxu0 }
  0xf1   :  { %194 = vtanh.f32 %v125_v20  ;;  %v120_v22 = vadd.f32 %v137_v18, %v119_v21 }
  0xf3   :  { %196 = vtanh.f32 %v120_v22 }
  0xfe   :  { %v195_v23 = vpop.eup %194 }
  0xff   :  { %131 = vst [vmem:[%s264_s3 + $0x8] sm:$0xff] %v195_v23 }
 0x100   :  { %v197_v24 = vpop.eup %196 }
 0x101   :  { %130 = vst [vmem:[%s264_s3] sm:$0xff] %v197_v24 }
 0x102   :  { %136 = vsyncpa [#allocation3], 1 }

</bundles_post_ra>
